<compile_context>
chip_gen: v7x
topology: tpu7x:2x2x1
jax: 0.10.0
libtpu: 0.0.40
codegen_flags: <defaults>
</compile_context>

<pallas_src>
import jax
import jax.numpy as jnp
import numpy as np
from jax.experimental import pallas as pl
from jax.experimental.pallas import tpu as pltpu


_MXU_MIN_CIN = 64   # contraction size from which the MXU path is used


def _round_up(n, m):
    return ((n + m - 1) // m) * m


# ----------------------------------------------------------------------------
# Kernels
# ----------------------------------------------------------------------------
def _ffn_unit_kernel_vpu(x_ref, w1_ref, b1_ref, w2_ref, o_ref):
    """Tiny-C_in path, transposed (T-on-lanes) layout.

    x_ref:  (Bb, C_in, T)  batch tile, T on the 128-lane axis
    w1_ref: (H, C_in)      l1 weight in PyTorch layout
    b1_ref: (H, 1)
    w2_ref: (H, 1)         l2 weight as a column
    o_ref:  (Bb, T)        softmax over T, lane-dense
    """
    _, C_in, _ = x_ref.shape
    x = x_ref[...]                                       # (Bb, C_in, T)

    # h[b, k, t] = sum_c w1[k, c] * x[b, c, t] + b1[k], built directly as
    # (Bb, H, T): each channel slice of x is a sublane slice and each weight
    # column is an (H, 1) vector broadcast over the T lanes -- no per-channel
    # lane broadcasts of x and no relayout afterwards.
    h = w1_ref[:, 0:1] * x[:, 0:1, :]                    # (H,1)*(Bb,1,T) -> (Bb,H,T)
    for c in range(1, C_in):                             # static unroll (tiny C_in)
        h = h + w1_ref[:, c:c + 1] * x[:, c:c + 1, :]
    h = jnp.tanh(h + b1_ref[...])                        # (Bb, H, T), EUP tanh

    # l2 (output width 1): VPU multiply + sublane reduce over H.  b2 omitted:
    # softmax over T is invariant to adding the same scalar to every position.
    s = jnp.sum(h * w2_ref[...], axis=1)                 # (Bb, T), lane-dense

    # Softmax over T (last axis -> lane-dense math, unmasked output store).
    m = jnp.max(s, axis=-1, keepdims=True)               # (Bb, 1)
    e = jnp.exp(s - m)                                   # (Bb, T)
    o_ref[...] = e / jnp.sum(e, axis=-1, keepdims=True)  # exact normalization


def _ffn_unit_kernel_mxu(x_ref, w1t_ref, b1_ref, w2_ref, o_ref):
    """Large-C_in path: flat (B*T, C_in) rows, MXU matmul.

    x_ref:   (Bb*T, C_in)  flat row tile (wrapper-side reshape, row-major/free)
    w1t_ref: (C_in, H)
    b1_ref:  (1, H)
    w2_ref:  (1, H)
    o_ref:   (Bb, T)
    """
    Bb, T = o_ref.shape
    h = jnp.dot(x_ref[...], w1t_ref[...],
                preferred_element_type=jnp.float32)      # (Bb*T, H) on the MXU
    h = jnp.tanh(h + b1_ref[...])
    # l2 as a lane reduce over H (output width 1 -> no dead MXU pass).
    s = jnp.sum(h * w2_ref[...], axis=-1, keepdims=True)  # (Bb*T, 1)
    s = s.reshape(Bb, T)                                 # small relayout only
    m = jnp.max(s, axis=-1, keepdims=True)
    e = jnp.exp(s - m)
    o_ref[...] = e / jnp.sum(e, axis=-1, keepdims=True)


# ----------------------------------------------------------------------------
# Tiling / budgeting
# ----------------------------------------------------------------------------
def _device_vmem_budget():
    """(tiling budget, vmem_limit_bytes, min grid steps) per TPU generation."""
    kind = ""
    try:
        kind = jax.devices()[0].device_kind.lower()
    except Exception:
        pass
    if "v7" in kind:
        # v7x: 64 MiB physical VMEM per TensorCore, 2 TCs per chip -> want
        # >= 2 grid steps so the "parallel" batch axis shards across cores.
        return 40 << 20, 48 << 20, 2
    # v5e / v6e: 128 MiB physical VMEM, single TensorCore.
    return 80 << 20, 96 << 20, 1


def _batch_tile_candidates(B):
    # Output block is (Bb, T): its second-to-last dim must be a multiple of 8
    # or equal to the full array dim.
    return [bb for bb in range(1, B + 1)
            if B % bb == 0 and (bb % 8 == 0 or bb == B)]


def _choose_batch_tile(B, T, C_in, H, budget_bytes, max_tile, transposed):
    """Largest legal batch tile whose *padded* per-step VMEM footprint fits."""
    t_lane = _round_up(T, 128)

    def step_bytes(bb):
        if transposed:                       # x (Bb, C_in, T), h (Bb, H, T)
            x_b = bb * _round_up(C_in, 8) * t_lane * 4
            h_b = bb * _round_up(H, 8) * t_lane * 4
            w_b = (_round_up(H, 8) * _round_up(C_in, 128)        # w1 (H, C_in)
                   + 2 * _round_up(H, 8) * 128) * 4              # b1, w2 (H, 1)
        else:                                # x (Bb*T, C_in), h (Bb*T, H)
            rows = _round_up(bb * T, 8)
            x_b = rows * _round_up(C_in, 128) * 4
            h_b = rows * _round_up(H, 128) * 4
            w_b = (_round_up(C_in, 8) * _round_up(H, 128)        # w1t (C_in, H)
                   + 2 * 8 * _round_up(H, 128)) * 4              # b1, w2 (1, H)
        o_b = _round_up(bb, 8) * t_lane * 4
        # in/out tiles double-buffered by the pipeline; weights stay resident.
        return 2 * x_b + h_b + 2 * o_b + 2 * w_b

    candidates = _batch_tile_candidates(B)
    best = None
    for bb in candidates:                    # ascending -> keep largest fit
        if bb <= max_tile and step_bytes(bb) <= budget_bytes:
            best = bb
    if best is None:
        # Smallest legal tile; vmem_limit_bytes below leaves extra headroom.
        best = candidates[0]
    return best


# ----------------------------------------------------------------------------
# Wrapper
# ----------------------------------------------------------------------------
def ffn_unit_forward(x, w1, b1, w2, b2=None):
    """x: (B, T, C_in); params in PyTorch layout. Returns (B, T) softmax weights.

    b2 is accepted for API parity but unused: the only output is the softmax
    over T, which is invariant to the constant l2 bias."""
    del b2
    x = jnp.asarray(x, jnp.float32)
    B, T, C_in = x.shape
    H = w1.shape[0]                          # inter_channels (PyTorch (H, C_in))

    budget, vmem_limit, min_steps = _device_vmem_budget()
    max_tile = B if min_steps <= 1 else max(1, B // min_steps)

    use_mxu = C_in >= _MXU_MIN_CIN
    Bb = _choose_batch_tile(B, T, C_in, H, budget, max_tile,
                            transposed=not use_mxu)
    assert B % Bb == 0
    grid = (B // Bb,)

    if use_mxu:
        # Lane-dense 2-D row layout for a clean MXU matmul; the reshape is
        # row-major and therefore free on the wrapper side.
        x_in = x.reshape(B * T, C_in)
        w1_p = jnp.asarray(w1, jnp.float32).T            # (C_in, H)
        b1_p = jnp.asarray(b1, jnp.float32).reshape(1, H)
        w2_p = jnp.asarray(w2, jnp.float32).reshape(1, H)
        kernel = _ffn_unit_kernel_mxu
        in_specs = [
            pl.BlockSpec((Bb * T, C_in), lambda g: (g, 0)),
            pl.BlockSpec((C_in, H), lambda g: (0, 0)),
            pl.BlockSpec((1, H), lambda g: (0, 0)),
            pl.BlockSpec((1, H), lambda g: (0, 0)),
        ]
        args = (x_in, w1_p, b1_p, w2_p)
    else:
        # Tiny C_in: feed x transposed so T sits on the 128-lane axis.  This
        # keeps the whole VPU path lane-dense and shrinks the x VMEM tile by
        # ~128/C_in; the one-off wrapper transpose is cheap for these shapes
        # (and upstream producers can emit this layout directly).
        x_in = jnp.transpose(x, (0, 2, 1))               # (B, C_in, T)
        w1_p = jnp.asarray(w1, jnp.float32)              # (H, C_in)
        b1_p = jnp.asarray(b1, jnp.float32).reshape(H, 1)
        w2_p = jnp.asarray(w2, jnp.float32).reshape(H, 1)
        kernel = _ffn_unit_kernel_vpu
        in_specs = [
            pl.BlockSpec((Bb, C_in, T), lambda g: (g, 0, 0)),
            pl.BlockSpec((H, C_in), lambda g: (0, 0)),
            pl.BlockSpec((H, 1), lambda g: (0, 0)),
            pl.BlockSpec((H, 1), lambda g: (0, 0)),
        ]
        args = (x_in, w1_p, b1_p, w2_p)

    out = pl.pallas_call(
        kernel,
        out_shape=jax.ShapeDtypeStruct((B, T), jnp.float32),
        grid_spec=pltpu.PrefetchScalarGridSpec(
            num_scalar_prefetch=0,
            grid=grid,
            in_specs=in_specs,
            out_specs=pl.BlockSpec((Bb, T), lambda g: (g, 0)),
        ),
        compiler_params=pltpu.CompilerParams(
            dimension_semantics=("parallel",),
            vmem_limit_bytes=vmem_limit),
    )(*args)
    return out
    # TODO(synk): for very long T (where even the smallest legal batch tile
    # overflows VMEM, most relevant on v7x's 64 MiB), add a second "arbitrary"
    # T grid axis with an online-softmax (running max/sum scratch, normalize
    # on the last T step).


def ffn_unit_reference(x, w1, b1, w2, b2):
    h = jnp.tanh(jnp.einsum("btc,hc->bth", x, w1) + b1)
    s = jnp.einsum("bth,oh->bto", h, w2) + b2            # (B, T, 1)
    return jax.nn.softmax(s[:, :, 0], axis=1)


if __name__ == "__main__":
    # Small shapes consistent with the module's forward.
    B, T = 2, 8
    in_channels, inter_channels = 4, 32

    key = jax.random.PRNGKey(0)
    kx, kw1, kb1, kw2, kb2 = jax.random.split(key, 5)

    x = jax.random.normal(kx, (B, T, in_channels), dtype=jnp.float32)

    # Deterministic parameter init (uniform, PyTorch-Linear-like bounds).
    bound1 = 1.0 / np.sqrt(in_channels)
    w1 = jax.random.uniform(kw1, (inter_channels, in_channels),
                            minval=-bound1, maxval=bound1, dtype=jnp.float32)
    b1 = jax.random.uniform(kb1, (inter_channels,),
                            minval=-bound1, maxval=bound1, dtype=jnp.float32)
    bound2 = 1.0 / np.sqrt(inter_channels)
    w2 = jax.random.uniform(kw2, (1, inter_channels),
                            minval=-bound2, maxval=bound2, dtype=jnp.float32)
    b2 = jax.random.uniform(kb2, (1,),
                            minval=-bound2, maxval=bound2, dtype=jnp.float32)

    y = ffn_unit_forward(x, w1, b1, w2, b2)
    y = jax.block_until_ready(y)

    y_ref = ffn_unit_reference(x, w1, b1, w2, b2)
    # Normalization is exact; slack only covers EUP tanh/exp vs XLA math.
    np.testing.assert_allclose(np.asarray(y), np.asarray(y_ref),
                               rtol=1e-4, atol=1e-5)
    assert y.shape == (B, T)

    print("KERNEL_OK")
</pallas_src>

<mosaic_0001>
module attributes {stable_mosaic.version = 11 : i64} {
  func.func @_ffn_unit_kernel_vpu(%arg0: i32, %arg1: memref<2x4x8xf32, #tpu.memory_space<vmem>>, %arg2: memref<32x4xf32, #tpu.memory_space<vmem>>, %arg3: memref<32x1xf32, #tpu.memory_space<vmem>>, %arg4: memref<32x1xf32, #tpu.memory_space<vmem>>, %arg5: memref<2x8xf32, #tpu.memory_space<vmem>>) attributes {dimension_semantics = [#tpu.dimension_semantics<parallel>], iteration_bounds = array<i64: 1>, scalar_prefetch = 0 : i64, scratch_operands = 0 : i64, tpu.core_type = #tpu.core_type<tc>, window_params = [{transform_indices = @transform_0, window_bounds = array<i64: 2, 4, 8>}, {pipeline_mode = #tpu.pipeline_mode<synchronous>, transform_indices = @transform_1, window_bounds = array<i64: 32, 4>}, {pipeline_mode = #tpu.pipeline_mode<synchronous>, transform_indices = @transform_2, window_bounds = array<i64: 32, 1>}, {pipeline_mode = #tpu.pipeline_mode<synchronous>, transform_indices = @transform_3, window_bounds = array<i64: 32, 1>}, {transform_indices = @transform_4, window_bounds = array<i64: 2, 8>}]} {
    %c0 = arith.constant 0 : index
    %c0_0 = arith.constant 0 : index
    %c0_1 = arith.constant 0 : index
    %0 = vector.load %arg1[%c0, %c0_0, %c0_1] : memref<2x4x8xf32, #tpu.memory_space<vmem>>, vector<2x4x8xf32>
    %c0_2 = arith.constant 0 : index
    %c0_3 = arith.constant 0 : index
    %1 = vector.load %arg2[%c0_2, %c0_3] : memref<32x4xf32, #tpu.memory_space<vmem>>, vector<32x1xf32>
    %2 = vector.extract_strided_slice %0 {offsets = [0, 0, 0], sizes = [2, 1, 8], strides = [1, 1, 1]} : vector<2x4x8xf32> to vector<2x1x8xf32>
    %3 = vector.shape_cast %1 : vector<32x1xf32> to vector<1x32x1xf32>
    %4 = vector.broadcast %3 : vector<1x32x1xf32> to vector<2x32x8xf32>
    %5 = vector.broadcast %2 : vector<2x1x8xf32> to vector<2x32x8xf32>
    %6 = arith.mulf %4, %5 : vector<2x32x8xf32>
    %c0_4 = arith.constant 0 : index
    %c1 = arith.constant 1 : index
    %7 = vector.load %arg2[%c0_4, %c1] : memref<32x4xf32, #tpu.memory_space<vmem>>, vector<32x1xf32>
    %8 = vector.extract_strided_slice %0 {offsets = [0, 1, 0], sizes = [2, 1, 8], strides = [1, 1, 1]} : vector<2x4x8xf32> to vector<2x1x8xf32>
    %9 = vector.shape_cast %7 : vector<32x1xf32> to vector<1x32x1xf32>
    %10 = vector.broadcast %9 : vector<1x32x1xf32> to vector<2x32x8xf32>
    %11 = vector.broadcast %8 : vector<2x1x8xf32> to vector<2x32x8xf32>
    %12 = arith.mulf %10, %11 : vector<2x32x8xf32>
    %13 = arith.addf %6, %12 : vector<2x32x8xf32>
    %c0_5 = arith.constant 0 : index
    %c2 = arith.constant 2 : index
    %14 = vector.load %arg2[%c0_5, %c2] : memref<32x4xf32, #tpu.memory_space<vmem>>, vector<32x1xf32>
    %15 = vector.extract_strided_slice %0 {offsets = [0, 2, 0], sizes = [2, 1, 8], strides = [1, 1, 1]} : vector<2x4x8xf32> to vector<2x1x8xf32>
    %16 = vector.shape_cast %14 : vector<32x1xf32> to vector<1x32x1xf32>
    %17 = vector.broadcast %16 : vector<1x32x1xf32> to vector<2x32x8xf32>
    %18 = vector.broadcast %15 : vector<2x1x8xf32> to vector<2x32x8xf32>
    %19 = arith.mulf %17, %18 : vector<2x32x8xf32>
    %20 = arith.addf %13, %19 : vector<2x32x8xf32>
    %c0_6 = arith.constant 0 : index
    %c3 = arith.constant 3 : index
    %21 = vector.load %arg2[%c0_6, %c3] : memref<32x4xf32, #tpu.memory_space<vmem>>, vector<32x1xf32>
    %22 = vector.extract_strided_slice %0 {offsets = [0, 3, 0], sizes = [2, 1, 8], strides = [1, 1, 1]} : vector<2x4x8xf32> to vector<2x1x8xf32>
    %23 = vector.shape_cast %21 : vector<32x1xf32> to vector<1x32x1xf32>
    %24 = vector.broadcast %23 : vector<1x32x1xf32> to vector<2x32x8xf32>
    %25 = vector.broadcast %22 : vector<2x1x8xf32> to vector<2x32x8xf32>
    %26 = arith.mulf %24, %25 : vector<2x32x8xf32>
    %27 = arith.addf %20, %26 : vector<2x32x8xf32>
    %c0_7 = arith.constant 0 : index
    %c0_8 = arith.constant 0 : index
    %28 = vector.load %arg3[%c0_7, %c0_8] : memref<32x1xf32, #tpu.memory_space<vmem>>, vector<32x1xf32>
    %29 = vector.shape_cast %28 : vector<32x1xf32> to vector<1x32x1xf32>
    %30 = vector.broadcast %29 : vector<1x32x1xf32> to vector<2x32x8xf32>
    %31 = arith.addf %27, %30 : vector<2x32x8xf32>
    %32 = math.tanh %31 : vector<2x32x8xf32>
    %c0_9 = arith.constant 0 : index
    %c0_10 = arith.constant 0 : index
    %33 = vector.load %arg4[%c0_9, %c0_10] : memref<32x1xf32, #tpu.memory_space<vmem>>, vector<32x1xf32>
    %34 = vector.shape_cast %33 : vector<32x1xf32> to vector<1x32x1xf32>
    %35 = vector.broadcast %34 : vector<1x32x1xf32> to vector<2x32x8xf32>
    %36 = arith.mulf %32, %35 : vector<2x32x8xf32>
    %cst = arith.constant dense<0.000000e+00> : vector<2x8xf32>
    %37 = vector.multi_reduction <add>, %36, %cst [1] : vector<2x32x8xf32> to vector<2x8xf32>
    %cst_11 = arith.constant dense<0xFF800000> : vector<2xf32>
    %38 = vector.multi_reduction <maximumf>, %37, %cst_11 [1] : vector<2x8xf32> to vector<2xf32>
    %39 = vector.shape_cast %38 : vector<2xf32> to vector<2x1xf32>
    %40 = vector.broadcast %39 : vector<2x1xf32> to vector<2x8xf32>
    %41 = arith.subf %37, %40 : vector<2x8xf32>
    %42 = math.exp %41 : vector<2x8xf32>
    %cst_12 = arith.constant dense<0.000000e+00> : vector<2xf32>
    %43 = vector.multi_reduction <add>, %42, %cst_12 [1] : vector<2x8xf32> to vector<2xf32>
    %44 = vector.shape_cast %43 : vector<2xf32> to vector<2x1xf32>
    %45 = vector.broadcast %44 : vector<2x1xf32> to vector<2x8xf32>
    %46 = arith.divf %42, %45 : vector<2x8xf32>
    %c0_13 = arith.constant 0 : index
    %c0_14 = arith.constant 0 : index
    %47 = vector.load %arg5[%c0_13, %c0_14] : memref<2x8xf32, #tpu.memory_space<vmem>>, vector<2x8xf32>
    tpu.vector_store %arg5[%c0_13, %c0_14], %46 {strides = array<i32>} : memref<2x8xf32, #tpu.memory_space<vmem>>, vector<2x8xf32>,
    return
  }
  func.func @transform_0(%arg0: i32) -> (i32, i32, i32) {
    %c0_i32 = arith.constant 0 : i32
    %c0_i32_0 = arith.constant 0 : i32
    %c0_i32_1 = arith.constant 0 : i32
    return %arg0, %c0_i32, %c0_i32_0 : i32, i32, i32
  }
  func.func @transform_1(%arg0: i32) -> (i32, i32) {
    %c0_i32 = arith.constant 0 : i32
    %c0_i32_0 = arith.constant 0 : i32
    %c0_i32_1 = arith.constant 0 : i32
    return %c0_i32, %c0_i32_0 : i32, i32
  }
  func.func @transform_2(%arg0: i32) -> (i32, i32) {
    %c0_i32 = arith.constant 0 : i32
    %c0_i32_0 = arith.constant 0 : i32
    %c0_i32_1 = arith.constant 0 : i32
    return %c0_i32, %c0_i32_0 : i32, i32
  }
  func.func @transform_3(%arg0: i32) -> (i32, i32) {
    %c0_i32 = arith.constant 0 : i32
    %c0_i32_0 = arith.constant 0 : i32
    %c0_i32_1 = arith.constant 0 : i32
    return %c0_i32, %c0_i32_0 : i32, i32
  }
  func.func @transform_4(%arg0: i32) -> (i32, i32) {
    %c0_i32 = arith.constant 0 : i32
    %c0_i32_0 = arith.constant 0 : i32
    return %arg0, %c0_i32 : i32, i32
  }
}

</mosaic_0001>

<bundles_post_ra>
// kernel: tpu_custom_call.1
= control target key start
LH: loop header
LB: loop body
LE: loop exit
PB: predicated region body
PF: predicated region fallthrough
CT: control target
= control target key end

     0   :  { %9 = vsyncpa [#allocation3], 0  ;;  %s688_s0 = inlined_call_operand.hbm [shape: f32[2,4,8], index: 0, kind: input, shape index: {}]   ;;  %s689_s1 = inlined_call_operand.hbm [shape: f32[32,4], index: 1, kind: input, shape index: {}]   ;;  %s690_s2 = inlined_call_operand.hbm [shape: f32[32,1], index: 2, kind: input, shape index: {}]   ;;  %s691_s3 = inlined_call_operand.hbm [shape: f32[32,1], index: 3, kind: input, shape index: {}]   ;;  %s692_s4 = inlined_call_operand.hbm [shape: f32[2,8], index: 4, kind: output, shape index: {}]  }
   0x1   :  { %10 = vsyncpa [#allocation6], 0 }
   0x2   :  { %11 = vsyncpa [#allocation9], 0 }
   0x3   :  { %12 = vsyncpa [#allocation4], 0  ;;  %s560_s15 = smov [#allocation5]   ;;  %s442_s19 = scalar_lea.hbm %s689_s1, 512 }
   0x4   :  { %s30_s16 = sshll.u32 %s560_s15, 4  ;;  %p443_p0 = scmp.ne.s32.totalorder %s689_s1, %s442_s19  ;;  %s31_s16 = int_to_ptr.vmem [resolvable:$true] %s30_s16 }
   0x5   :  { %p446_p1 = scmp.lt.u32.totalorder %s442_s19, %s689_s1 }
   0x7   :  { %p448_p2 = pnand %p446_p1, %p443_p0 }
   0x9   :  { %451 = shalt.err (!%p448_p2)
}
   0xa   :  { %s452_s24 = scalar_lea.vmem %s31_s16, 512  ;;  %p457_p4 = scmp.lt.s32.totalorder %s31_s16, %s31_s16 }
   0xb   :  { %p453_p3 = scmp.ne.s32.totalorder %s31_s16, %s452_s24  ;;  %p458_p5 = scmp.lt.s32.totalorder %s452_s24, %s452_s24 }
   0xd   :  { %p459_p6 = por %p458_p5, %p457_p4 }
   0xf   :  { %p460_p7 = pnand %p459_p6, %p453_p3 }
  0x11   :  { %463 = shalt.err (!%p460_p7)
}
  0x12   :  { %s561_s25 = smov 128   ;;  %s562_s26 = smov 8  }
  0x13   :  { %36 = dma.hbm_to_vmem [thread:$0]  %s689_s1, 512, %s31_s16, [#allocation6], %s561_s25, %s561_s25, %s562_s26  }
  0x14   :  { %s563_s29 = smov [#allocation2]   ;;  %s464_s7 = scalar_lea.hbm %s688_s0, 128 }
  0x15   :  { %s18_s30 = sshll.u32 %s563_s29, 4  ;;  %p465_p8 = scmp.ne.s32.totalorder %s688_s0, %s464_s7  ;;  %s19_s30 = int_to_ptr.vmem [resolvable:$true] %s18_s30 }
  0x16   :  { %p468_p9 = scmp.lt.u32.totalorder %s464_s7, %s688_s0 }
  0x18   :  { %p470_p10 = pnand %p468_p9, %p465_p8 }
  0x1a   :  { %473 = shalt.err (!%p470_p10)
}
  0x1b   :  { %s474_s12 = scalar_lea.vmem %s19_s30, 128  ;;  %p479_p12 = scmp.lt.s32.totalorder %s19_s30, %s19_s30 }
  0x1c   :  { %p475_p11 = scmp.ne.s32.totalorder %s19_s30, %s474_s12  ;;  %p480_p13 = scmp.lt.s32.totalorder %s474_s12, %s474_s12 }
  0x1e   :  { %p481_p0 = por %p480_p13, %p479_p12 }
  0x20   :  { %p482_p1 = pnand %p481_p0, %p475_p11 }
  0x22   :  { %485 = shalt.err (!%p482_p1)
}
  0x23   :  { %s564_s1 = smov 64   ;;  %s565_s13 = smov 4  }
  0x24   :  { %24 = dma.hbm_to_vmem [thread:$0]  %s688_s0, 128, %s19_s30, [#allocation3], %s564_s1, %s564_s1, %s565_s13  }
  0x25   :  { %s566_s16 = smov [#allocation7]   ;;  %s567_s18 = smov [#allocation8]  }
  0x26   :  { %s42_s17 = sshll.u32 %s566_s16, 4  ;;  %s54_s19 = sshll.u32 %s567_s18, 4  ;;  %s43_s17 = int_to_ptr.vmem [resolvable:$true] %s42_s17  ;;  %s625_s19 = int_to_ptr.vmem [resolvable:$true] %s54_s19 }
  0x27   :  { %s486_s22 = scalar_lea.hbm %s690_s2, 512 }
  0x28   :  { %p487_p2 = scmp.ne.s32.totalorder %s690_s2, %s486_s22  ;;  %p490_p3 = scmp.lt.u32.totalorder %s486_s22, %s690_s2 }
  0x2a   :  { %p492_p4 = pnand %p490_p3, %p487_p2 }
  0x2c   :  { %495 = shalt.err (!%p492_p4)
}
  0x2d   :  { %s496_s0 = scalar_lea.vmem %s43_s17, 512  ;;  %p501_p6 = scmp.lt.s32.totalorder %s43_s17, %s43_s17 }
  0x2e   :  { %p497_p5 = scmp.ne.s32.totalorder %s43_s17, %s496_s0  ;;  %p502_p7 = scmp.lt.s32.totalorder %s496_s0, %s496_s0 }
  0x30   :  { %p503_p8 = por %p502_p7, %p501_p6 }
  0x32   :  { %p504_p9 = pnand %p503_p8, %p497_p5 }
  0x34   :  { %507 = shalt.err (!%p504_p9)
}
  0x35   :  { %48 = dma.hbm_to_vmem [thread:$0]  %s690_s2, 512, %s43_s17, [#allocation6], %s561_s25, %s561_s25, %s562_s26  }
  0x36   :  { %s508_s7 = scalar_lea.hbm %s691_s3, 512 }
  0x37   :  { %p509_p10 = scmp.ne.s32.totalorder %s691_s3, %s508_s7  ;;  %p512_p11 = scmp.lt.u32.totalorder %s508_s7, %s691_s3 }
  0x39   :  { %p514_p12 = pnand %p512_p11, %p509_p10 }
  0x3b   :  { %517 = shalt.err (!%p514_p12)
}
  0x3c   :  { %s518_s12 = scalar_lea.vmem %s625_s19, 512  ;;  %p523_p0 = scmp.lt.s32.totalorder %s625_s19, %s625_s19 }
  0x3d   :  { %p519_p13 = scmp.ne.s32.totalorder %s625_s19, %s518_s12  ;;  %p524_p1 = scmp.lt.s32.totalorder %s518_s12, %s518_s12 }
  0x3f   :  { %p525_p2 = por %p524_p1, %p523_p0 }
  0x41   :  { %p526_p3 = pnand %p525_p2, %p519_p13 }
  0x43   :  { %529 = shalt.err (!%p526_p3)
}
  0x44   :  { %60 = dma.hbm_to_vmem [thread:$0]  %s691_s3, 512, %s625_s19, [#allocation9], %s561_s25, %s561_s25, %s562_s26  }
  0x45   :  { %552 = dma.done.wait [#allocation3], 128  }
  0x46   :  { %553 = vsyncadd [#allocation3], 4294967168 }
  0x47   :  { %554 = dma.done.wait [#allocation6], 1024  }
  0x48   :  { %555 = vsyncadd [#allocation6], 4294966272 }
  0x49   :  { %556 = dma.done.wait [#allocation9], 512  }
  0x4a   :  { %557 = vsyncadd [#allocation9], 4294966784  ;;  %v568_v0 = vmov 1   ;;  %v569_v1 = vmov 0   ;;  %v75_v2 = vld [vmem:[#allocation5] sm:$0xff]  ;;  %v76_v3 = vld [vmem:[#allocation5 + $0x8] sm:$0xff]  ;;  %v99_v24 = vlaneseq }
  0x4b   :  { %406 = vset.pattern.permute.xlu1 %v568_v0  ;;  %405 = vset.pattern.permute.xlu0 %v569_v1  ;;  %v77_v4 = vld [vmem:[#allocation5 + $0x10] sm:$0xff]  ;;  %v570_v5 = vmov 2   ;;  %v78_v6 = vld [vmem:[#allocation5 + $0x18] sm:$0xff]  ;;  %v571_v7 = vmov 3   ;;  %v236_v8 = vld [vmem:[#allocation7 + $0x8] sm:$0xff]  ;;  %vm307_vm0 = vcmask 64512  }
  0x4c   :  { %116 = vperm.xlu1 %406, %v75_v2   ;;  %81 = vperm.xlu0 %405, %v75_v2   ;;  %v275_v9 = vld [vmem:[#allocation8] sm:$0xff]  ;;  %v277_v10 = vld [vmem:[#allocation8 + $0x10] sm:$0xff]  ;;  %v238_v13 = vld [vmem:[#allocation7 + $0x18] sm:$0xff]  ;;  %v100_v25 = vshrl.u32 %v99_v24, 7  ;;  %vm336_vm1 = vcmask 1041409   ;;  %vm339_vm2 = vcmask 58368  }
  0x4d   :  { %v235_v11 = vld [vmem:[#allocation7] sm:$0xff]  ;;  %v237_v12 = vld [vmem:[#allocation7 + $0x10] sm:$0xff]  ;;  %v276_v14 = vld [vmem:[#allocation8 + $0x8] sm:$0xff]  ;;  %s572_s3 = smov [#allocation10]  }
  0x4e   :  { %v278_v15 = vld [vmem:[#allocation8 + $0x18] sm:$0xff]  ;;  %v133_v28 = vsub.s32 1, %v100_v25  ;;  %v101_v29 = vsub.s32 0, %v100_v25  ;;  %v173_v33 = vsub.s32 2, %v100_v25  ;;  %v213_v34 = vsub.s32 3, %v100_v25  ;;  %s381_s25 = sshll.u32 %s572_s3, 4  ;;  %s382_s25 = int_to_ptr.vmem [resolvable:$true] %s381_s25 }
  0x4f   :  { %v73_v30 = vld [vmem:[#allocation2] sm:$0xf]  ;;  %v74_v32 = vld [vmem:[#allocation2 + $0x4] sm:$0xf]  ;;  %s530_s26 = scalar_lea.vmem %s382_s25, 32  ;;  %p535_p5 = scmp.lt.s32.totalorder %s382_s25, %s382_s25 }
  0x50   :  { %120 = vperm.xlu1 %406, %v76_v3   ;;  %86 = vperm.xlu0 %405, %v76_v3   ;;  %v134_v36 = vrot.slane %v73_v30, %v133_v28  ;;  %v102_v37 = vrot.slane %v73_v30, %v101_v29  ;;  %v138_v38 = vrot.slane %v74_v32, %v133_v28  ;;  %p531_p4 = scmp.ne.s32.totalorder %s382_s25, %s530_s26  ;;  %p536_p6 = scmp.lt.s32.totalorder %s530_s26, %s530_s26 }
  0x51   :  { %v106_v39 = vrot.slane %v74_v32, %v101_v29  ;;  %v174_v40 = vrot.slane %v73_v30, %v173_v33  ;;  %v178_v42 = vrot.slane %v74_v32, %v173_v33  ;;  %v214_v43 = vrot.slane %v73_v30, %v213_v34 }
  0x52   :  { %v218_v44 = vrot.slane %v74_v32, %v213_v34  ;;  %p537_p7 = por %p536_p6, %p535_p5 }
  0x54   :  { %124 = vperm.xlu1 %406, %v77_v4   ;;  %91 = vperm.xlu0 %405, %v77_v4   ;;  %p538_p8 = pnand %p537_p7, %p531_p4 }
  0x58   :  { %408 = vset.pattern.permute.xlu1 %v570_v5  ;;  %407 = vset.pattern.permute.xlu0 %v570_v5 }
  0x59   :  { %160 = vperm.xlu1 %408, %v76_v3   ;;  %156 = vperm.xlu0 %407, %v75_v2  }
  0x5d   :  { %409 = vset.pattern.permute.xlu1 %v569_v1  ;;  %410 = vset.pattern.permute.xlu0 %v568_v0 }
  0x5e   :  { %96 = vperm.xlu1 %409, %v78_v6   ;;  %128 = vperm.xlu0 %410, %v78_v6  }
  0x62   :  { %411 = vset.pattern.permute.xlu1 %v570_v5  ;;  %413 = vset.pattern.permute.xlu0 %v571_v7 }
  0x63   :  { %164 = vperm.xlu1 %411, %v77_v4   ;;  %200 = vperm.xlu0 %413, %v76_v3  }
  0x67   :  { %412 = vset.pattern.permute.xlu1 %v571_v7  ;;  %208 = vperm.xlu0 %413, %v78_v6  }
  0x68   :  { %196 = vperm.xlu1 %412, %v75_v2  }
  0x6b   :  { %417 = vset.pattern.permute.xlu0 %v569_v1 }
  0x6c   :  { %414 = vset.pattern.permute.xlu1 %v570_v5  ;;  %246 = vperm.xlu0 %417, %v236_v8  }
  0x6d   :  { %168 = vperm.xlu1 %414, %v78_v6  }
  0x70   :  { %281 = vperm.xlu0 %417, %v275_v9  }
  0x71   :  { %415 = vset.pattern.permute.xlu1 %v571_v7 }
  0x72   :  { %204 = vperm.xlu1 %415, %v77_v4  }
  0x74   :  { %291 = vperm.xlu0 %417, %v277_v10  }
  0x76   :  { %416 = vset.pattern.permute.xlu1 %v569_v1 }
  0x77   :  { %241 = vperm.xlu1 %416, %v235_v11  }
  0x7b   :  { %251 = vperm.xlu1 %416, %v237_v12  }
  0x7f   :  { %256 = vperm.xlu1 %416, %v238_v13  }
  0x83   :  { %286 = vperm.xlu1 %416, %v276_v14  }
  0x87   :  { %296 = vperm.xlu1 %416, %v278_v15  }
  0xcb   :  { %v117_v16 = vpop.permute.xlu1 %116  ;;  %v82_v17 = vpop.permute.xlu0 %81 }
  0xcc   :  { %v139_v45 = vmul.f32 %v134_v36, %v117_v16  ;;  %v107_v46 = vmul.f32 %v102_v37, %v82_v17  ;;  %v143_v49 = vmul.f32 %v138_v38, %v117_v16  ;;  %v111_v50 = vmul.f32 %v106_v39, %v82_v17 }
  0xce   :  { %v147_v58 = vadd.f32 %v139_v45, %v107_v46  ;;  %v151_v61 = vadd.f32 %v143_v49, %v111_v50 }
  0xcf   :  { %v121_v18 = vpop.permute.xlu1 %120  ;;  %v87_v19 = vpop.permute.xlu0 %86 }
  0xd0   :  { %v140_v47 = vmul.f32 %v134_v36, %v121_v18  ;;  %v108_v48 = vmul.f32 %v102_v37, %v87_v19  ;;  %v144_v51 = vmul.f32 %v138_v38, %v121_v18  ;;  %v112_v52 = vmul.f32 %v106_v39, %v87_v19 }
  0xd2   :  { %v148_v59 = vadd.f32 %v140_v47, %v108_v48  ;;  %v152_v62 = vadd.f32 %v144_v51, %v112_v52 }
  0xd3   :  { %v125_v20 = vpop.permute.xlu1 %124  ;;  %v92_v21 = vpop.permute.xlu0 %91 }
  0xd4   :  { %v141_v63 = vmul.f32 %v134_v36, %v125_v20  ;;  %v145_v1 = vmul.f32 %v138_v38, %v125_v20  ;;  %v109_v2 = vmul.f32 %v102_v37, %v92_v21  ;;  %v113_v5 = vmul.f32 %v106_v39, %v92_v21 }
  0xd6   :  { %v149_v19 = vadd.f32 %v141_v63, %v109_v2  ;;  %v153_v25 = vadd.f32 %v145_v1, %v113_v5 }
  0xd8   :  { %v161_v22 = vpop.permute.xlu1 %160  ;;  %v157_v23 = vpop.permute.xlu0 %156 }
  0xd9   :  { %v180_v54 = vmul.f32 %v174_v40, %v161_v22  ;;  %v184_v55 = vmul.f32 %v178_v42, %v161_v22  ;;  %v179_v56 = vmul.f32 %v174_v40, %v157_v23  ;;  %v183_v4 = vmul.f32 %v178_v42, %v157_v23 }
  0xdb   :  { %v188_v3 = vadd.f32 %v180_v54, %v148_v59  ;;  %v192_v6 = vadd.f32 %v184_v55, %v152_v62  ;;  %v187_v7 = vadd.f32 %v179_v56, %v147_v58  ;;  %v191_v22 = vadd.f32 %v183_v4, %v151_v61 }
  0xdd   :  { %v97_v26 = vpop.permute.xlu1 %96  ;;  %v129_v27 = vpop.permute.xlu0 %128 }
  0xde   :  { %v110_v10 = vmul.f32 %v102_v37, %v97_v26  ;;  %v114_v11 = vmul.f32 %v106_v39, %v97_v26  ;;  %v142_v15 = vmul.f32 %v134_v36, %v129_v27  ;;  %v146_v16 = vmul.f32 %v138_v38, %v129_v27 }
  0xe0   :  { %v150_v26 = vadd.f32 %v142_v15, %v110_v10  ;;  %v154_v34 = vadd.f32 %v146_v16, %v114_v11 }
  0xe2   :  { %v165_v31 = vpop.permute.xlu1 %164  ;;  %v201_v35 = vpop.permute.xlu0 %200 }
  0xe3   :  { %v220_v60 = vmul.f32 %v214_v43, %v201_v35  ;;  %v224_v0 = vmul.f32 %v218_v44, %v201_v35  ;;  %v181_v17 = vmul.f32 %v174_v40, %v165_v31  ;;  %v185_v20 = vmul.f32 %v178_v42, %v165_v31 }
  0xe5   :  { %v228_v13 = vadd.f32 %v220_v60, %v188_v3  ;;  %v232_v18 = vadd.f32 %v224_v0, %v192_v6  ;;  %v189_v35 = vadd.f32 %v181_v17, %v149_v19  ;;  %v193_v36 = vadd.f32 %v185_v20, %v153_v25 }
  0xe6   :  { %v209_v53 = vpop.permute.xlu0 %208 }
  0xe7   :  { %v197_v41 = vpop.permute.xlu1 %196  ;;  %v222_v39 = vmul.f32 %v214_v43, %v209_v53 }
  0xe8   :  { %v219_v8 = vmul.f32 %v214_v43, %v197_v41  ;;  %v223_v12 = vmul.f32 %v218_v44, %v197_v41  ;;  %v226_v41 = vmul.f32 %v218_v44, %v209_v53 }
  0xea   :  { %v227_v28 = vadd.f32 %v219_v8, %v187_v7  ;;  %v231_v33 = vadd.f32 %v223_v12, %v191_v22 }
  0xeb   :  { %v247_v9 = vpop.permute.xlu0 %246 }
  0xec   :  { %v169_v57 = vpop.permute.xlu1 %168  ;;  %v260_v24 = vadd.f32 %v247_v9, %v228_v13  ;;  %v264_v23 = vadd.f32 %v247_v9, %v232_v18 }
  0xed   :  { %v182_v21 = vmul.f32 %v174_v40, %v169_v57  ;;  %v186_v29 = vmul.f32 %v178_v42, %v169_v57 }
  0xee   :  { %418 = vtanh.f32 %v260_v24 }
  0xef   :  { %420 = vtanh.f32 %v264_v23  ;;  %v190_v31 = vadd.f32 %v182_v21, %v150_v26  ;;  %v194_v45 = vadd.f32 %v186_v29, %v154_v34 }
  0xf1   :  { %v205_v14 = vpop.permute.xlu1 %204  ;;  %v230_v49 = vadd.f32 %v222_v39, %v190_v31  ;;  %v234_v50 = vadd.f32 %v226_v41, %v194_v45 }
  0xf2   :  { %v221_v30 = vmul.f32 %v214_v43, %v205_v14  ;;  %v225_v32 = vmul.f32 %v218_v44, %v205_v14  ;;  %v282_v43 = vpop.permute.xlu0 %281 }
  0xf4   :  { %v229_v40 = vadd.f32 %v221_v30, %v189_v35  ;;  %v233_v46 = vadd.f32 %v225_v32, %v193_v36 }
  0xf6   :  { %v242_v37 = vpop.permute.xlu1 %241  ;;  %v292_v63 = vpop.permute.xlu0 %291 }
  0xf7   :  { %v259_v27 = vadd.f32 %v242_v37, %v227_v28  ;;  %v263_v38 = vadd.f32 %v242_v37, %v231_v33 }
  0xf8   :  { %v419_v55 = vpop.eup %418 }
  0xf9   :  { %422 = vtanh.f32 %v259_v27  ;;  %v421_v44 = vpop.eup %420 }
  0xfa   :  { %424 = vtanh.f32 %v263_v38  ;;  %v252_v42 = vpop.permute.xlu1 %251 }
  0xfb   :  { %v261_v47 = vadd.f32 %v252_v42, %v229_v40  ;;  %v265_v48 = vadd.f32 %v252_v42, %v233_v46 }
  0xfd   :  { %426 = vtanh.f32 %v261_v47 }
  0xfe   :  { %428 = vtanh.f32 %v265_v48  ;;  %v257_v51 = vpop.permute.xlu1 %256 }
  0xff   :  { %v262_v52 = vadd.f32 %v257_v51, %v230_v49  ;;  %v266_v54 = vadd.f32 %v257_v51, %v234_v50 }
 0x101   :  { %430 = vtanh.f32 %v262_v52 }
 0x102   :  { %432 = vtanh.f32 %v266_v54  ;;  %v287_v53 = vpop.permute.xlu1 %286 }
 0x103   :  { %v423_v56 = vpop.eup %422  ;;  %v300_v59 = vmul.f32 %v419_v55, %v287_v53  ;;  %v304_v61 = vmul.f32 %v421_v44, %v287_v53 }
 0x104   :  { %v425_v57 = vpop.eup %424  ;;  %v299_v58 = vmul.f32 %v423_v56, %v282_v43 }
 0x105   :  { %v303_v60 = vmul.f32 %v425_v57, %v282_v43  ;;  %v309_v3 = vsel %vm307_vm0, %v300_v59, 0.0  ;;  %v322_v6 = vsel %vm307_vm0, %v304_v61, 0.0 }
 0x106   :  { %v308_v1 = vsel %vm307_vm0, %v299_v58, 0.0  ;;  %v297_v11 = vpop.permute.xlu1 %296 }
 0x107   :  { %v427_v62 = vpop.eup %426  ;;  %v321_v4 = vsel %vm307_vm0, %v303_v60, 0.0  ;;  %v310_v10 = vadd.f32 %v309_v3, %v308_v1 }
 0x108   :  { %v429_v0 = vpop.eup %428  ;;  %v301_v2 = vmul.f32 %v427_v62, %v292_v63  ;;  %v323_v13 = vadd.f32 %v322_v6, %v321_v4 }
 0x109   :  { %v305_v5 = vmul.f32 %v429_v0, %v292_v63 }
 0x10a   :  { %v311_v7 = vsel %vm307_vm0, %v301_v2, 0.0 }
 0x10b   :  { %v431_v8 = vpop.eup %430  ;;  %v324_v9 = vsel %vm307_vm0, %v305_v5, 0.0  ;;  %v312_v16 = vadd.f32 %v311_v7, %v310_v10 }
 0x10c   :  { %v433_v12 = vpop.eup %432  ;;  %v302_v14 = vmul.f32 %v431_v8, %v297_v11  ;;  %v325_v18 = vadd.f32 %v324_v9, %v323_v13 }
 0x10d   :  { %v306_v15 = vmul.f32 %v433_v12, %v297_v11 }
 0x10e   :  { %v313_v17 = vsel %vm307_vm0, %v302_v14, 0.0 }
 0x10f   :  { %v314_v19 = vadd.f32 %v313_v17, %v312_v16  ;;  %v326_v22 = vsel %vm307_vm0, %v306_v15, 0.0 }
 0x110   :  { %v327_v20 = vadd.f32 %v326_v22, %v325_v18 }
 0x111   :  { %v315_v24 = vrot.slane %v314_v19, 4 }
 0x112   :  { %v328_v25 = vrot.slane %v327_v20, 4 }
 0x113   :  { %v316_v23 = vadd.f32 %v315_v24, %v314_v19 }
 0x114   :  { %v329_v21 = vadd.f32 %v328_v25, %v327_v20 }
 0x115   :  { %v317_v28 = vrot.slane %v316_v23, 2 }
 0x116   :  { %v330_v29 = vrot.slane %v329_v21, 2 }
 0x117   :  { %v318_v30 = vadd.f32 %v317_v28, %v316_v23 }
 0x118   :  { %v331_v32 = vadd.f32 %v330_v29, %v329_v21 }
 0x119   :  { %v319_v33 = vrot.slane %v318_v30, 1 }
 0x11a   :  { %v332_v26 = vrot.slane %v331_v32, 1 }
 0x11b   :  { %v320_v34 = vadd.f32 %v319_v33, %v318_v30 }
 0x11c   :  { %v333_v35 = vadd.f32 %v332_v26, %v331_v32 }
 0x11e   :  { %v337_v37 = vsel %vm336_vm1, %v333_v35, %v320_v34 }
 0x11f   :  { %v340_v36 = vsel %vm339_vm2, %v337_v37, -inf }
 0x120   :  { %341 = vmax.xlane.f32.xlu0 %v340_v36 }
 0x1ad   :  { %v342_v27 = vpop.xlane.xlu0 %341 }
 0x1ae   :  { %v344_v38 = vrot.slane %v342_v27, 1  ;;  %v347_v39 = vsub.f32 %v320_v34, %v342_v27 }
 0x1b0   :  { %v348_v41 = vsub.f32 %v333_v35, %v344_v38  ;;  %v349_v31 = vmul.f32 1.442695, %v347_v39 }
 0x1b2   :  { %v351_v45 = vmul.f32 1.442695, %v348_v41 }
 0x1b4   :  { %434 = vpow2.f32 %v351_v45 }
 0x1b5   :  { %436 = vpow2.f32 %v349_v31 }
 0x1be   :  { %v435_v40 = vpop.eup %434 }
 0x1bf   :  { %v355_v46 = vrot.slane %v435_v40, 7  ;;  %v437_v42 = vpop.eup %436 }
 0x1c1   :  { %v356_v47 = vsel %vm336_vm1, %v355_v46, %v437_v42 }
 0x1c2   :  { %v358_v48 = vsel %vm339_vm2, %v356_v47, 0.0 }
 0x1c3   :  { %359 = vadd.xlane.f32.xlu1 %v358_v48 }
 0x250   :  { %v360_v49 = vpop.xlane.xlu1 %359 }
 0x251   :  { %v362_v50 = vrot.slane %v360_v49, 1  ;;  %438 = vrcp.f32 %v360_v49 }
 0x253   :  { %440 = vrcp.f32 %v362_v50 }
 0x25b   :  { %v439_v51 = vpop.eup %438 }
 0x25c   :  { %v366_v55 = vmul.f32 %v439_v51, %v437_v42 }
 0x25d   :  { %v441_v52 = vpop.eup %440 }
 0x25e   :  { %v368_v54 = vmul.f32 %v441_v52, %v435_v40 }
 0x260   :  { %v371_v43 = vrot.slane %v368_v54, 7 }
 0x262   :  { %v372_v44 = vsel %vm336_vm1, %v371_v43, %v366_v55 }
 0x263   :  { %374 = vst.msk [vmem:[#allocation10] sm:$0x3] %vm339_vm2, %v372_v44 }
 0x264   :  { %541 = shalt.err (!%p538_p8)
}
 0x265   :  { %s542_s15 = scalar_lea.hbm %s692_s4, 32 }
 0x266   :  { %p543_p9 = scmp.ne.s32.totalorder %s692_s4, %s542_s15  ;;  %p546_p10 = scmp.lt.u32.totalorder %s542_s15, %s692_s4 }
 0x268   :  { %p548_p11 = pnand %p546_p10, %p543_p9 }
 0x26a   :  { %551 = shalt.err (!%p548_p11)
}
 0x26b   :  { %384 = dma.vmem_to_hbm [thread:$0]  %s382_s25, 32, %s692_s4, [#allocation4]  }
 0x26c   :  { %558 = dma.done.wait [#allocation4], 32  }
 0x26d   :  { %559 = vsyncadd [#allocation4], 4294967264 }
 0x26e   :  { %388 = vsyncpa [#allocation3], 1 }
 0x26f   :  { %389 = vsyncpa [#allocation6], 1 }
 0x270   :  { %390 = vsyncpa [#allocation9], 1 }
 0x271   :  { %391 = vsyncpa [#allocation4], 1 }

</bundles_post_ra>
